<compile_context>
chip_gen: v7x
topology: tpu7x:2x2x1
jax: 0.10.0
libtpu: 0.0.40
codegen_flags: <defaults>
</compile_context>

<pallas_src>
import functools

import jax
import jax.numpy as jnp
from jax import lax
from jax.experimental import pallas as pl
from jax.experimental.pallas import tpu as pltpu

LEAKY_SLOPE = 0.01   # nn.LeakyReLU default
NEG_BIG = -1e30      # plain Python float -> jaxpr literal (NOT a captured const)


def _leaky_relu(v):
    return jnp.where(v > 0, v, LEAKY_SLOPE * v)


def _mm(a, b):
    """a @ b, f32 accumulation (contract a's dim 1 with b's dim 0)."""
    return lax.dot_general(a, b, (((1,), (0,)), ((), ())),
                           preferred_element_type=jnp.float32)


def _mm_t(a, b):
    """a.T @ b without materialising the transpose (contract dim 0 of both)."""
    return lax.dot_general(a, b, (((0,), (0,)), ((), ())),
                           preferred_element_type=jnp.float32)


def gnn_layer4_kernel(
    # ---- inputs (edge-blocked unless noted) ----
    src_ref, tgt_ref,            # [eb, 1] int32 (padded edges hold index == N)
    x_ref,                       # [N, node_dim]            (full, resident)
    xsrc_ref, xtgt_ref,          # [eb, node_dim]           (pre-gathered x[src], x[tgt])
    ea_ref,                      # [eb, edge_dim]
    we_ref, whu_ref, whw_ref,    # [edge_dim|node_dim, D]   (pre-transposed, full)
    watt_ref,                    # [D, H*D]                 (full)
    wlin_ref, blin_ref,          # [D, D], [1, D]
    wlin2_ref, blin2_ref,        # [node_dim, D], [1, D]
    wlin3_ref, blin3_ref,        # [edge_dim, D], [1, D]
    # ---- outputs ----
    emb_ref,                     # [N, D]   (single resident block, written last)
    attr_ref,                    # [eb, D]  (per edge block)
    # ---- VMEM scratch (persists across the grid) ----
    cmax_ref,                    # [1, H*D] running per-column logit max
    ssum_ref,                    # [N, H*D] per-source-node exp-sums
    agg_ref,                     # [N, D]   aggregated messages per target node
):
    p = pl.program_id(0)          # 0: accumulate softmax stats, 1: normalise + scatter
    e = pl.program_id(1)          # edge-block index
    nb = pl.num_programs(1)

    eb = src_ref.shape[0]
    N = x_ref.shape[0]
    D = we_ref.shape[1]
    HD = watt_ref.shape[1]
    H = HD // D

    @pl.when(jnp.logical_and(p == 0, e == 0))
    def _init():
        cmax_ref[...] = jnp.full(cmax_ref.shape, NEG_BIG, cmax_ref.dtype)
        ssum_ref[...] = jnp.zeros_like(ssum_ref)
        agg_ref[...] = jnp.zeros_like(agg_ref)

    src = src_ref[...]                                        # [eb, 1]
    tgt = tgt_ref[...]
    node_iota = lax.broadcasted_iota(jnp.int32, (eb, N), 1)
    oh_src = (src == node_iota).astype(jnp.float32)           # [eb, N]
    oh_tgt = (tgt == node_iota).astype(jnp.float32)           # [eb, N]
    valid = jnp.logical_and(src >= 0, src < N)                # [eb, 1] (padded/bad edges)
    valid_f = valid.astype(jnp.float32)

    # MessagePassingLayer (recomputed per pass: 4 small matmuls, which avoids an
    # [E, D]/[E, H*D] HBM round-trip for the intermediates).
    msg = _leaky_relu(_mm(ea_ref[...], we_ref[...])
                      + _mm(xsrc_ref[...], whu_ref[...])
                      + _mm(xtgt_ref[...], whw_ref[...]))     # [eb, D]
    logits = _mm(msg, watt_ref[...])                          # [eb, H*D] (all heads)
    logits = jnp.where(valid, logits, NEG_BIG)

    # attr output (identical in both passes; stored every step so every visited
    # output block holds valid data when written back).
    attr_ref[...] = 0.5 * (_mm(ea_ref[...], wlin3_ref[...]) + blin3_ref[...] + msg)

    @pl.when(p == 0)
    def _accumulate():
        # Online-softmax accumulation: running per-column max + per-source sums.
        m_old = cmax_ref[...]                                 # [1, HD]
        m_new = jnp.maximum(m_old, jnp.max(logits, axis=0, keepdims=True))
        w = jnp.exp(logits - m_new) * valid_f                 # [eb, HD]
        ssum_ref[...] = ssum_ref[...] * jnp.exp(m_old - m_new) + _mm_t(oh_src, w)
        cmax_ref[...] = m_new

    @pl.when(p == 1)
    def _scatter():
        w = jnp.exp(logits - cmax_ref[...]) * valid_f         # [eb, HD]
        gsum = _mm(oh_src, ssum_ref[...])                     # [eb, HD] exact one-hot gather
        gsum = jnp.where(gsum > 0.0, gsum, 1.0)               # guard padded/empty groups
        probs = w / gsum                                      # f32 divide -> EUP reciprocal path

        # Head mean folded before the target scatter: one tiny [HD, D] MXU matmul.
        k_iota = lax.broadcasted_iota(jnp.int32, (HD, D), 0)
        j_iota = lax.broadcasted_iota(jnp.int32, (HD, D), 1)
        head_avg = ((k_iota % D) == j_iota).astype(jnp.float32) * (1.0 / H)
        pm = _mm(probs, head_avg)                             # [eb, D] = mean_h probs_h

        agg_ref[...] += _mm_t(oh_tgt, msg * pm)               # scatter-add to target nodes

        @pl.when(e == nb - 1)
        def _finalize():
            lin_out = _mm(agg_ref[...], wlin_ref[...]) + blin_ref[...]
            emb_ref[...] = (_mm(x_ref[...], wlin2_ref[...]) + blin2_ref[...]
                            + _leaky_relu(lin_out))


@functools.partial(jax.jit, static_argnames=("edge_block",))
def gnn_layer4(x, edge_index, edge_attr, params, *, edge_block=512):
    """Forward of GNN_Layer4 (the torch `batch` arg is unused by the module)."""
    x = x.astype(jnp.float32)
    edge_attr = edge_attr.astype(jnp.float32)
    N, node_dim = x.shape
    E = edge_index.shape[1]
    edge_dim = edge_attr.shape[1]
    D = params["W_lin"].shape[0]
    H = params["W_att"].shape[0] // D

    # ---- edge blocking (E padded up to a multiple of the block size) ----
    eb = int(min(edge_block, max(8, -(-E // 8) * 8)))
    eb = max(8, (eb // 8) * 8)
    e_pad = -(-E // eb) * eb
    nb = e_pad // eb
    pad = e_pad - E

    src = edge_index[0].astype(jnp.int32)
    tgt = edge_index[1].astype(jnp.int32)
    # Real gathers in the wrapper (O(E * node_dim)), not [E, N] one-hot matmuls.
    x_src = jnp.pad(jnp.take(x, src, axis=0), ((0, pad), (0, 0)))
    x_tgt = jnp.pad(jnp.take(x, tgt, axis=0), ((0, pad), (0, 0)))
    ea_p = jnp.pad(edge_attr, ((0, pad), (0, 0)))
    src_p = jnp.pad(src, (0, pad), constant_values=N).reshape(e_pad, 1)  # N == "invalid"
    tgt_p = jnp.pad(tgt, (0, pad), constant_values=N).reshape(e_pad, 1)

    f32 = jnp.float32
    we_t = params["W_e"].T.astype(f32)         # [edge_dim, D]
    whu_t = params["W_hu"].T.astype(f32)       # [node_dim, D]
    whw_t = params["W_hw"].T.astype(f32)       # [node_dim, D]
    watt_t = params["W_att"].T.astype(f32)     # [D, H*D]
    wlin_t = params["W_lin"].T.astype(f32)     # [D, D]
    wlin2_t = params["W_lin2"].T.astype(f32)   # [node_dim, D]
    wlin3_t = params["W_lin3"].T.astype(f32)   # [edge_dim, D]
    blin = params["b_lin"].reshape(1, D).astype(f32)
    blin2 = params["b_lin2"].reshape(1, D).astype(f32)
    blin3 = params["b_lin3"].reshape(1, D).astype(f32)

    def eblock(width):
        return pl.BlockSpec((eb, width), lambda p, e: (e, 0))

    def full(arr):
        return pl.BlockSpec(arr.shape, lambda p, e: (0, 0))

    in_specs = [
        eblock(1), eblock(1),                       # src, tgt
        full(x),                                    # x (resident)
        eblock(node_dim), eblock(node_dim),         # x[src], x[tgt]
        eblock(edge_dim),                           # edge_attr
        full(we_t), full(whu_t), full(whw_t), full(watt_t),
        full(wlin_t), full(blin), full(wlin2_t), full(blin2),
        full(wlin3_t), full(blin3),
    ]
    out_specs = (
        pl.BlockSpec((N, D), lambda p, e: (0, 0)),   # emb: resident, written on last step
        pl.BlockSpec((eb, D), lambda p, e: (e, 0)),  # attr: per edge block
    )

    emb, attr = pl.pallas_call(
        gnn_layer4_kernel,
        grid=(2, nb),                                # (pass, edge block)
        in_specs=in_specs,
        out_specs=out_specs,
        out_shape=(jax.ShapeDtypeStruct((N, D), jnp.float32),
                   jax.ShapeDtypeStruct((e_pad, D), jnp.float32)),
        scratch_shapes=[
            pltpu.VMEM((1, H * D), jnp.float32),     # running per-column logit max
            pltpu.VMEM((N, H * D), jnp.float32),     # per-source exp sums
            pltpu.VMEM((N, D), jnp.float32),         # aggregated messages
        ],
        compiler_params=pltpu.CompilerParams(
            # Both axes carry sequential state (two-pass structure + shared
            # per-node accumulators), so they must stay "arbitrary".
            dimension_semantics=("arbitrary", "arbitrary"),
            vmem_limit_bytes=48 * 1024 * 1024,
        ),
    )(src_p, tgt_p, x, x_src, x_tgt, ea_p,
      we_t, whu_t, whw_t, watt_t,
      wlin_t, blin, wlin2_t, blin2, wlin3_t, blin3)

    return emb, attr[:E]


def ref_forward(x, edge_index, edge_attr, params):
    """Pure-JAX reference mirroring the PyTorch forward (per-source softmax max)."""
    src, tgt = edge_index[0], edge_index[1]
    N = x.shape[0]
    D = params["W_lin"].shape[0]
    H = params["W_att"].shape[0] // D

    msg_pre = (edge_attr @ params["W_e"].T
               + x[src] @ params["W_hu"].T
               + x[tgt] @ params["W_hw"].T)
    messages = _leaky_relu(msg_pre)
    logits = (messages @ params["W_att"].T).reshape(-1, H, D)

    agg = jnp.zeros((N, D), jnp.float32)
    for h in range(H):
        lh = logits[:, h]
        mx = jax.ops.segment_max(lh, src, num_segments=N)
        w = jnp.exp(lh - mx[src])
        s = jax.ops.segment_sum(w, src, num_segments=N)
        p = w / s[src]
        agg = agg + jax.ops.segment_sum(p * messages, tgt, num_segments=N)
    agg = agg / H

    emb = (x @ params["W_lin2"].T + params["b_lin2"]
           + _leaky_relu(agg @ params["W_lin"].T + params["b_lin"]))
    attr = (edge_attr @ params["W_lin3"].T + params["b_lin3"] + messages) / 2
    return emb, attr


def init_params(key, node_dim, out_dim, edge_dim, heads):
    ks = jax.random.split(key, 10)

    def w(k, shape, fan_in):
        return (jax.random.normal(k, shape, jnp.float32) / jnp.sqrt(fan_in)).astype(jnp.float32)

    return {
        "W_e":    w(ks[0], (out_dim, edge_dim), edge_dim),
        "W_hu":   w(ks[1], (out_dim, node_dim), node_dim),
        "W_hw":   w(ks[2], (out_dim, node_dim), node_dim),
        "W_att":  w(ks[3], (out_dim * heads, out_dim), out_dim),
        "W_lin":  w(ks[4], (out_dim, out_dim), out_dim),
        "b_lin":  w(ks[5], (out_dim,), out_dim),
        "W_lin2": w(ks[6], (out_dim, node_dim), node_dim),
        "b_lin2": w(ks[7], (out_dim,), node_dim),
        "W_lin3": w(ks[8], (out_dim, edge_dim), edge_dim),
        "b_lin3": w(ks[9], (out_dim,), edge_dim),
    }


if __name__ == "__main__":
    N, E = 8, 18
    node_dim, out_dim, edge_dim, heads = 8, 16, 4, 4

    key = jax.random.PRNGKey(0)
    kx, ke, ki, kp = jax.random.split(key, 4)
    x = jax.random.normal(kx, (N, node_dim), jnp.float32)
    edge_attr = jax.random.normal(ke, (E, edge_dim), jnp.float32)
    edge_index = jax.random.randint(ki, (2, E), 0, N, jnp.int32)
    params = init_params(kp, node_dim, out_dim, edge_dim, heads)
    # `batch` is accepted by the torch module but unused in forward.

    # edge_block=8 -> grid = (2 passes, 3 edge blocks), exercises blocking + padding.
    emb, attr = gnn_layer4(x, edge_index, edge_attr, params, edge_block=8)
    jax.block_until_ready((emb, attr))

    emb_ref, attr_ref = ref_forward(x, edge_index, edge_attr, params)
    assert emb.shape == (N, out_dim) and attr.shape == (E, out_dim)
    assert jnp.allclose(emb, emb_ref, rtol=1e-3, atol=1e-3), "embeddings mismatch"
    assert jnp.allclose(attr, attr_ref, rtol=1e-3, atol=1e-3), "attr mismatch"

    print("KERNEL_OK")
</pallas_src>

<mosaic_0001>
module attributes {stable_mosaic.version = 11 : i64} {
  func.func @gnn_layer4_kernel(%arg0: i32, %arg1: i32, %arg2: memref<8x1xi32, #tpu.memory_space<vmem>>, %arg3: memref<8x1xi32, #tpu.memory_space<vmem>>, %arg4: memref<8x8xf32, #tpu.memory_space<vmem>>, %arg5: memref<8x8xf32, #tpu.memory_space<vmem>>, %arg6: memref<8x8xf32, #tpu.memory_space<vmem>>, %arg7: memref<8x4xf32, #tpu.memory_space<vmem>>, %arg8: memref<4x16xf32, #tpu.memory_space<vmem>>, %arg9: memref<8x16xf32, #tpu.memory_space<vmem>>, %arg10: memref<8x16xf32, #tpu.memory_space<vmem>>, %arg11: memref<16x64xf32, #tpu.memory_space<vmem>>, %arg12: memref<16x16xf32, #tpu.memory_space<vmem>>, %arg13: memref<1x16xf32, #tpu.memory_space<vmem>>, %arg14: memref<8x16xf32, #tpu.memory_space<vmem>>, %arg15: memref<1x16xf32, #tpu.memory_space<vmem>>, %arg16: memref<4x16xf32, #tpu.memory_space<vmem>>, %arg17: memref<1x16xf32, #tpu.memory_space<vmem>>, %arg18: memref<8x16xf32, #tpu.memory_space<vmem>>, %arg19: memref<8x16xf32, #tpu.memory_space<vmem>>, %arg20: memref<1x64xf32, #tpu.memory_space<vmem>>, %arg21: memref<8x64xf32, #tpu.memory_space<vmem>>, %arg22: memref<8x16xf32, #tpu.memory_space<vmem>>) attributes {dimension_semantics = [#tpu.dimension_semantics<arbitrary>, #tpu.dimension_semantics<arbitrary>], iteration_bounds = array<i64: 2, 3>, scalar_prefetch = 0 : i64, scratch_operands = 3 : i64, tpu.core_type = #tpu.core_type<tc>, window_params = [{transform_indices = @transform_0, window_bounds = array<i64: 8, 1>}, {transform_indices = @transform_1, window_bounds = array<i64: 8, 1>}, {pipeline_mode = #tpu.pipeline_mode<synchronous>, transform_indices = @transform_2, window_bounds = array<i64: 8, 8>}, {transform_indices = @transform_3, window_bounds = array<i64: 8, 8>}, {transform_indices = @transform_4, window_bounds = array<i64: 8, 8>}, {transform_indices = @transform_5, window_bounds = array<i64: 8, 4>}, {pipeline_mode = #tpu.pipeline_mode<synchronous>, transform_indices = @transform_6, window_bounds = array<i64: 4, 16>}, {pipeline_mode = #tpu.pipeline_mode<synchronous>, transform_indices = @transform_7, window_bounds = array<i64: 8, 16>}, {pipeline_mode = #tpu.pipeline_mode<synchronous>, transform_indices = @transform_8, window_bounds = array<i64: 8, 16>}, {pipeline_mode = #tpu.pipeline_mode<synchronous>, transform_indices = @transform_9, window_bounds = array<i64: 16, 64>}, {pipeline_mode = #tpu.pipeline_mode<synchronous>, transform_indices = @transform_10, window_bounds = array<i64: 16, 16>}, {pipeline_mode = #tpu.pipeline_mode<synchronous>, transform_indices = @transform_11, window_bounds = array<i64: 1, 16>}, {pipeline_mode = #tpu.pipeline_mode<synchronous>, transform_indices = @transform_12, window_bounds = array<i64: 8, 16>}, {pipeline_mode = #tpu.pipeline_mode<synchronous>, transform_indices = @transform_13, window_bounds = array<i64: 1, 16>}, {pipeline_mode = #tpu.pipeline_mode<synchronous>, transform_indices = @transform_14, window_bounds = array<i64: 4, 16>}, {pipeline_mode = #tpu.pipeline_mode<synchronous>, transform_indices = @transform_15, window_bounds = array<i64: 1, 16>}, {pipeline_mode = #tpu.pipeline_mode<synchronous>, transform_indices = @transform_16, window_bounds = array<i64: 8, 16>}, {transform_indices = @transform_17, window_bounds = array<i64: 8, 16>}]} {
    %c0_i32 = arith.constant 0 : i32
    %0 = arith.cmpi eq, %arg0, %c0_i32 : i32
    %c0_i32_0 = arith.constant 0 : i32
    %1 = arith.cmpi eq, %arg1, %c0_i32_0 : i32
    %2 = arith.andi %0, %1 : i1
    %3 = arith.extui %2 : i1 to i32
    %c0_i32_1 = arith.constant 0 : i32
    %4 = arith.cmpi ne, %3, %c0_i32_1 : i32
    scf.if %4 {
      %cst_39 = arith.constant -1.000000e+30 : f32
      %61 = vector.broadcast %cst_39 : f32 to vector<1x64xf32>
      %c0_40 = arith.constant 0 : index
      %c0_41 = arith.constant 0 : index
      %62 = vector.load %arg20[%c0_40, %c0_41] : memref<1x64xf32, #tpu.memory_space<vmem>>, vector<1x64xf32>
      tpu.vector_store %arg20[%c0_40, %c0_41], %61 {strides = array<i32>} : memref<1x64xf32, #tpu.memory_space<vmem>>, vector<1x64xf32>,
      %cst_42 = arith.constant 0.000000e+00 : f32
      %63 = vector.broadcast %cst_42 : f32 to vector<8x64xf32>
      %c0_43 = arith.constant 0 : index
      %c0_44 = arith.constant 0 : index
      %64 = vector.load %arg21[%c0_43, %c0_44] : memref<8x64xf32, #tpu.memory_space<vmem>>, vector<8x64xf32>
      tpu.vector_store %arg21[%c0_43, %c0_44], %63 {strides = array<i32>} : memref<8x64xf32, #tpu.memory_space<vmem>>, vector<8x64xf32>,
      %cst_45 = arith.constant 0.000000e+00 : f32
      %65 = vector.broadcast %cst_45 : f32 to vector<8x16xf32>
      %c0_46 = arith.constant 0 : index
      %c0_47 = arith.constant 0 : index
      %66 = vector.load %arg22[%c0_46, %c0_47] : memref<8x16xf32, #tpu.memory_space<vmem>>, vector<8x16xf32>
      tpu.vector_store %arg22[%c0_46, %c0_47], %65 {strides = array<i32>} : memref<8x16xf32, #tpu.memory_space<vmem>>, vector<8x16xf32>,
    } else {
    }
    %c0 = arith.constant 0 : index
    %c0_2 = arith.constant 0 : index
    %5 = vector.load %arg2[%c0, %c0_2] : memref<8x1xi32, #tpu.memory_space<vmem>>, vector<8x1xi32>
    %c0_3 = arith.constant 0 : index
    %c0_4 = arith.constant 0 : index
    %6 = vector.load %arg3[%c0_3, %c0_4] : memref<8x1xi32, #tpu.memory_space<vmem>>, vector<8x1xi32>
    %7 = tpu.iota {dimensions = array<i32: 1>} : vector<8x8xi32>
    %8 = vector.broadcast %5 : vector<8x1xi32> to vector<8x8xi32>
    %9 = arith.cmpi eq, %8, %7 : vector<8x8xi32>
    %10 = arith.extui %9 : vector<8x8xi1> to vector<8x8xi32>
    %11 = arith.sitofp %10 : vector<8x8xi32> to vector<8x8xf32>
    %12 = vector.broadcast %6 : vector<8x1xi32> to vector<8x8xi32>
    %13 = arith.cmpi eq, %12, %7 : vector<8x8xi32>
    %14 = arith.extui %13 : vector<8x8xi1> to vector<8x8xi32>
    %15 = arith.sitofp %14 : vector<8x8xi32> to vector<8x8xf32>
    %c0_i32_5 = arith.constant 0 : i32
    %16 = vector.broadcast %c0_i32_5 : i32 to vector<8x1xi32>
    %17 = arith.cmpi sge, %5, %16 : vector<8x1xi32>
    %c8_i32 = arith.constant 8 : i32
    %18 = vector.broadcast %c8_i32 : i32 to vector<8x1xi32>
    %19 = arith.cmpi slt, %5, %18 : vector<8x1xi32>
    %20 = arith.andi %17, %19 : vector<8x1xi1>
    %21 = arith.extui %20 : vector<8x1xi1> to vector<8x1xi32>
    %22 = arith.sitofp %21 : vector<8x1xi32> to vector<8x1xf32>
    %c0_6 = arith.constant 0 : index
    %c0_7 = arith.constant 0 : index
    %23 = vector.load %arg7[%c0_6, %c0_7] : memref<8x4xf32, #tpu.memory_space<vmem>>, vector<8x4xf32>
    %c0_8 = arith.constant 0 : index
    %c0_9 = arith.constant 0 : index
    %24 = vector.load %arg8[%c0_8, %c0_9] : memref<4x16xf32, #tpu.memory_space<vmem>>, vector<4x16xf32>
    %cst = arith.constant dense<0.000000e+00> : vector<8x16xf32>
    %25 = tpu.matmul %23, %24, %cst {dimension_numbers = #tpu.dot_dimension_numbers<[1], [0], [0], [1], [0, 0, 1, 1], [], []>} : vector<8x4xf32>, vector<4x16xf32>, vector<8x16xf32> -> vector<8x16xf32>
    %c0_10 = arith.constant 0 : index
    %c0_11 = arith.constant 0 : index
    %26 = vector.load %arg5[%c0_10, %c0_11] : memref<8x8xf32, #tpu.memory_space<vmem>>, vector<8x8xf32>
    %c0_12 = arith.constant 0 : index
    %c0_13 = arith.constant 0 : index
    %27 = vector.load %arg9[%c0_12, %c0_13] : memref<8x16xf32, #tpu.memory_space<vmem>>, vector<8x16xf32>
    %cst_14 = arith.constant dense<0.000000e+00> : vector<8x16xf32>
    %28 = tpu.matmul %26, %27, %cst_14 {dimension_numbers = #tpu.dot_dimension_numbers<[1], [0], [0], [1], [0, 0, 1, 1], [], []>} : vector<8x8xf32>, vector<8x16xf32>, vector<8x16xf32> -> vector<8x16xf32>
    %29 = arith.addf %25, %28 : vector<8x16xf32>
    %c0_15 = arith.constant 0 : index
    %c0_16 = arith.constant 0 : index
    %30 = vector.load %arg6[%c0_15, %c0_16] : memref<8x8xf32, #tpu.memory_space<vmem>>, vector<8x8xf32>
    %c0_17 = arith.constant 0 : index
    %c0_18 = arith.constant 0 : index
    %31 = vector.load %arg10[%c0_17, %c0_18] : memref<8x16xf32, #tpu.memory_space<vmem>>, vector<8x16xf32>
    %cst_19 = arith.constant dense<0.000000e+00> : vector<8x16xf32>
    %32 = tpu.matmul %30, %31, %cst_19 {dimension_numbers = #tpu.dot_dimension_numbers<[1], [0], [0], [1], [0, 0, 1, 1], [], []>} : vector<8x8xf32>, vector<8x16xf32>, vector<8x16xf32> -> vector<8x16xf32>
    %33 = arith.addf %29, %32 : vector<8x16xf32>
    %cst_20 = arith.constant 0.000000e+00 : f32
    %34 = vector.broadcast %cst_20 : f32 to vector<8x16xf32>
    %35 = arith.cmpf ogt, %33, %34 : vector<8x16xf32>
    %cst_21 = arith.constant 0.00999999977 : f32
    %36 = vector.broadcast %cst_21 : f32 to vector<8x16xf32>
    %37 = arith.mulf %36, %33 : vector<8x16xf32>
    %38 = arith.select %35, %33, %37 : vector<8x16xi1>, vector<8x16xf32>
    %c0_22 = arith.constant 0 : index
    %c0_23 = arith.constant 0 : index
    %39 = vector.load %arg11[%c0_22, %c0_23] : memref<16x64xf32, #tpu.memory_space<vmem>>, vector<16x64xf32>
    %cst_24 = arith.constant dense<0.000000e+00> : vector<8x64xf32>
    %40 = tpu.matmul %38, %39, %cst_24 {dimension_numbers = #tpu.dot_dimension_numbers<[1], [0], [0], [1], [0, 0, 1, 1], [], []>} : vector<8x16xf32>, vector<16x64xf32>, vector<8x64xf32> -> vector<8x64xf32>
    %cst_25 = arith.constant -1.000000e+30 : f32
    %41 = vector.shape_cast %20 : vector<8x1xi1> to vector<8x1xi1>
    %42 = vector.broadcast %41 : vector<8x1xi1> to vector<8x64xi1>
    %43 = vector.broadcast %cst_25 : f32 to vector<8x64xf32>
    %44 = arith.select %42, %40, %43 : vector<8x64xi1>, vector<8x64xf32>
    %c0_26 = arith.constant 0 : index
    %c0_27 = arith.constant 0 : index
    %45 = vector.load %arg7[%c0_26, %c0_27] : memref<8x4xf32, #tpu.memory_space<vmem>>, vector<8x4xf32>
    %c0_28 = arith.constant 0 : index
    %c0_29 = arith.constant 0 : index
    %46 = vector.load %arg16[%c0_28, %c0_29] : memref<4x16xf32, #tpu.memory_space<vmem>>, vector<4x16xf32>
    %cst_30 = arith.constant dense<0.000000e+00> : vector<8x16xf32>
    %47 = tpu.matmul %45, %46, %cst_30 {dimension_numbers = #tpu.dot_dimension_numbers<[1], [0], [0], [1], [0, 0, 1, 1], [], []>} : vector<8x4xf32>, vector<4x16xf32>, vector<8x16xf32> -> vector<8x16xf32>
    %c0_31 = arith.constant 0 : index
    %c0_32 = arith.constant 0 : index
    %48 = vector.load %arg17[%c0_31, %c0_32] : memref<1x16xf32, #tpu.memory_space<vmem>>, vector<1x16xf32>
    %49 = vector.broadcast %48 : vector<1x16xf32> to vector<8x16xf32>
    %50 = arith.addf %47, %49 : vector<8x16xf32>
    %51 = arith.addf %50, %38 : vector<8x16xf32>
    %cst_33 = arith.constant 5.000000e-01 : f32
    %52 = vector.broadcast %cst_33 : f32 to vector<8x16xf32>
    %53 = arith.mulf %52, %51 : vector<8x16xf32>
    %c0_34 = arith.constant 0 : index
    %c0_35 = arith.constant 0 : index
    %54 = vector.load %arg19[%c0_34, %c0_35] : memref<8x16xf32, #tpu.memory_space<vmem>>, vector<8x16xf32>
    tpu.vector_store %arg19[%c0_34, %c0_35], %53 {strides = array<i32>} : memref<8x16xf32, #tpu.memory_space<vmem>>, vector<8x16xf32>,
    %c0_i32_36 = arith.constant 0 : i32
    %55 = arith.cmpi eq, %arg0, %c0_i32_36 : i32
    %56 = arith.extui %55 : i1 to i32
    %c0_i32_37 = arith.constant 0 : i32
    %57 = arith.cmpi ne, %56, %c0_i32_37 : i32
    scf.if %57 {
      %c0_39 = arith.constant 0 : index
      %c0_40 = arith.constant 0 : index
      %61 = vector.load %arg20[%c0_39, %c0_40] : memref<1x64xf32, #tpu.memory_space<vmem>>, vector<1x64xf32>
      %cst_41 = arith.constant dense<0xFF800000> : vector<64xf32>
      %62 = vector.multi_reduction <maximumf>, %44, %cst_41 [0] : vector<8x64xf32> to vector<64xf32>
      %63 = vector.shape_cast %62 : vector<64xf32> to vector<1x64xf32>
      %64 = arith.maximumf %61, %63 : vector<1x64xf32>
      %65 = vector.broadcast %64 : vector<1x64xf32> to vector<8x64xf32>
      %66 = arith.subf %44, %65 : vector<8x64xf32>
      %67 = math.exp %66 : vector<8x64xf32>
      %68 = vector.broadcast %22 : vector<8x1xf32> to vector<8x64xf32>
      %69 = arith.mulf %67, %68 : vector<8x64xf32>
      %c0_42 = arith.constant 0 : index
      %c0_43 = arith.constant 0 : index
      %70 = vector.load %arg21[%c0_42, %c0_43] : memref<8x64xf32, #tpu.memory_space<vmem>>, vector<8x64xf32>
      %71 = arith.subf %61, %64 : vector<1x64xf32>
      %72 = math.exp %71 : vector<1x64xf32>
      %73 = vector.broadcast %72 : vector<1x64xf32> to vector<8x64xf32>
      %74 = arith.mulf %70, %73 : vector<8x64xf32>
      %cst_44 = arith.constant dense<0.000000e+00> : vector<8x64xf32>
      %75 = tpu.matmul %11, %69, %cst_44 {dimension_numbers = #tpu.dot_dimension_numbers<[0], [0], [1], [1], [0, 1, 1, 1], [], []>} : vector<8x8xf32>, vector<8x64xf32>, vector<8x64xf32> -> vector<8x64xf32>
      %76 = arith.addf %74, %75 : vector<8x64xf32>
      %c0_45 = arith.constant 0 : index
      %c0_46 = arith.constant 0 : index
      %77 = vector.load %arg21[%c0_45, %c0_46] : memref<8x64xf32, #tpu.memory_space<vmem>>, vector<8x64xf32>
      tpu.vector_store %arg21[%c0_45, %c0_46], %76 {strides = array<i32>} : memref<8x64xf32, #tpu.memory_space<vmem>>, vector<8x64xf32>,
      %c0_47 = arith.constant 0 : index
      %c0_48 = arith.constant 0 : index
      %78 = vector.load %arg20[%c0_47, %c0_48] : memref<1x64xf32, #tpu.memory_space<vmem>>, vector<1x64xf32>
      tpu.vector_store %arg20[%c0_47, %c0_48], %64 {strides = array<i32>} : memref<1x64xf32, #tpu.memory_space<vmem>>, vector<1x64xf32>,
    } else {
    }
    %c1_i32 = arith.constant 1 : i32
    %58 = arith.cmpi eq, %arg0, %c1_i32 : i32
    %59 = arith.extui %58 : i1 to i32
    %c0_i32_38 = arith.constant 0 : i32
    %60 = arith.cmpi ne, %59, %c0_i32_38 : i32
    scf.if %60 {
      %c0_39 = arith.constant 0 : index
      %c0_40 = arith.constant 0 : index
      %61 = vector.load %arg20[%c0_39, %c0_40] : memref<1x64xf32, #tpu.memory_space<vmem>>, vector<1x64xf32>
      %62 = vector.broadcast %61 : vector<1x64xf32> to vector<8x64xf32>
      %63 = arith.subf %44, %62 : vector<8x64xf32>
      %64 = math.exp %63 : vector<8x64xf32>
      %65 = vector.broadcast %22 : vector<8x1xf32> to vector<8x64xf32>
      %66 = arith.mulf %64, %65 : vector<8x64xf32>
      %c0_41 = arith.constant 0 : index
      %c0_42 = arith.constant 0 : index
      %67 = vector.load %arg21[%c0_41, %c0_42] : memref<8x64xf32, #tpu.memory_space<vmem>>, vector<8x64xf32>
      %cst_43 = arith.constant dense<0.000000e+00> : vector<8x64xf32>
      %68 = tpu.matmul %11, %67, %cst_43 {dimension_numbers = #tpu.dot_dimension_numbers<[1], [0], [0], [1], [0, 0, 1, 1], [], []>} : vector<8x8xf32>, vector<8x64xf32>, vector<8x64xf32> -> vector<8x64xf32>
      %cst_44 = arith.constant 0.000000e+00 : f32
      %69 = vector.broadcast %cst_44 : f32 to vector<8x64xf32>
      %70 = arith.cmpf ogt, %68, %69 : vector<8x64xf32>
      %cst_45 = arith.constant 1.000000e+00 : f32
      %71 = vector.broadcast %cst_45 : f32 to vector<8x64xf32>
      %72 = arith.select %70, %68, %71 : vector<8x64xi1>, vector<8x64xf32>
      %73 = arith.divf %66, %72 : vector<8x64xf32>
      %74 = tpu.iota {dimensions = array<i32: 0>} : vector<64x16xi32>
      %75 = tpu.iota {dimensions = array<i32: 1>} : vector<64x16xi32>
      %c16_i32 = arith.constant 16 : i32
      %c0_i32_46 = arith.constant 0 : i32
      %76 = arith.cmpi eq, %c16_i32, %c0_i32_46 : i32
      %c1_i32_47 = arith.constant 1 : i32
      %77 = arith.select %76, %c1_i32_47, %c16_i32 : i32
      %78 = vector.broadcast %77 : i32 to vector<64x16xi32>
      %79 = arith.remsi %74, %78 : vector<64x16xi32>
      %c0_i32_48 = arith.constant 0 : i32
      %80 = vector.broadcast %c0_i32_48 : i32 to vector<64x16xi32>
      %81 = arith.cmpi ne, %79, %80 : vector<64x16xi32>
      %c0_i32_49 = arith.constant 0 : i32
      %82 = vector.broadcast %c0_i32_49 : i32 to vector<64x16xi32>
      %83 = arith.cmpi slt, %79, %82 : vector<64x16xi32>
      %c0_i32_50 = arith.constant 0 : i32
      %84 = arith.cmpi slt, %77, %c0_i32_50 : i32
      %85 = vector.broadcast %84 : i1 to vector<64x16xi1>
      %86 = vector.broadcast %85 : vector<64x16xi1> to vector<64x16xi1>
      %87 = arith.xori %83, %86 : vector<64x16xi1>
      %88 = arith.andi %87, %81 : vector<64x16xi1>
      %89 = vector.broadcast %77 : i32 to vector<64x16xi32>
      %90 = arith.addi %79, %89 : vector<64x16xi32>
      %91 = arith.select %88, %90, %79 : vector<64x16xi1>, vector<64x16xi32>
      %92 = arith.cmpi eq, %91, %75 : vector<64x16xi32>
      %93 = arith.extui %92 : vector<64x16xi1> to vector<64x16xi32>
      %94 = arith.sitofp %93 : vector<64x16xi32> to vector<64x16xf32>
      %cst_51 = arith.constant 2.500000e-01 : f32
      %95 = vector.broadcast %cst_51 : f32 to vector<64x16xf32>
      %96 = arith.mulf %94, %95 : vector<64x16xf32>
      %cst_52 = arith.constant dense<0.000000e+00> : vector<8x16xf32>
      %97 = tpu.matmul %73, %96, %cst_52 {dimension_numbers = #tpu.dot_dimension_numbers<[1], [0], [0], [1], [0, 0, 1, 1], [], []>} : vector<8x64xf32>, vector<64x16xf32>, vector<8x16xf32> -> vector<8x16xf32>
      %c0_53 = arith.constant 0 : index
      %c0_54 = arith.constant 0 : index
      %98 = vector.load %arg22[%c0_53, %c0_54] : memref<8x16xf32, #tpu.memory_space<vmem>>, vector<8x16xf32>
      %99 = arith.mulf %38, %97 : vector<8x16xf32>
      %cst_55 = arith.constant dense<0.000000e+00> : vector<8x16xf32>
      %100 = tpu.matmul %15, %99, %cst_55 {dimension_numbers = #tpu.dot_dimension_numbers<[0], [0], [1], [1], [0, 1, 1, 1], [], []>} : vector<8x8xf32>, vector<8x16xf32>, vector<8x16xf32> -> vector<8x16xf32>
      %101 = arith.addf %98, %100 : vector<8x16xf32>
      %c0_56 = arith.constant 0 : index
      %c0_57 = arith.constant 0 : index
      %102 = vector.load %arg22[%c0_56, %c0_57] : memref<8x16xf32, #tpu.memory_space<vmem>>, vector<8x16xf32>
      tpu.vector_store %arg22[%c0_56, %c0_57], %101 {strides = array<i32>} : memref<8x16xf32, #tpu.memory_space<vmem>>, vector<8x16xf32>,
      %c2_i32 = arith.constant 2 : i32
      %103 = arith.cmpi eq, %arg1, %c2_i32 : i32
      %104 = arith.extui %103 : i1 to i32
      %c0_i32_58 = arith.constant 0 : i32
      %105 = arith.cmpi ne, %104, %c0_i32_58 : i32
      scf.if %105 {
        %c0_59 = arith.constant 0 : index
        %c0_60 = arith.constant 0 : index
        %106 = vector.load %arg22[%c0_59, %c0_60] : memref<8x16xf32, #tpu.memory_space<vmem>>, vector<8x16xf32>
        %c0_61 = arith.constant 0 : index
        %c0_62 = arith.constant 0 : index
        %107 = vector.load %arg12[%c0_61, %c0_62] : memref<16x16xf32, #tpu.memory_space<vmem>>, vector<16x16xf32>
        %cst_63 = arith.constant dense<0.000000e+00> : vector<8x16xf32>
        %108 = tpu.matmul %106, %107, %cst_63 {dimension_numbers = #tpu.dot_dimension_numbers<[1], [0], [0], [1], [0, 0, 1, 1], [], []>} : vector<8x16xf32>, vector<16x16xf32>, vector<8x16xf32> -> vector<8x16xf32>
        %c0_64 = arith.constant 0 : index
        %c0_65 = arith.constant 0 : index
        %109 = vector.load %arg13[%c0_64, %c0_65] : memref<1x16xf32, #tpu.memory_space<vmem>>, vector<1x16xf32>
        %110 = vector.broadcast %109 : vector<1x16xf32> to vector<8x16xf32>
        %111 = arith.addf %108, %110 : vector<8x16xf32>
        %c0_66 = arith.constant 0 : index
        %c0_67 = arith.constant 0 : index
        %112 = vector.load %arg4[%c0_66, %c0_67] : memref<8x8xf32, #tpu.memory_space<vmem>>, vector<8x8xf32>
        %c0_68 = arith.constant 0 : index
        %c0_69 = arith.constant 0 : index
        %113 = vector.load %arg14[%c0_68, %c0_69] : memref<8x16xf32, #tpu.memory_space<vmem>>, vector<8x16xf32>
        %cst_70 = arith.constant dense<0.000000e+00> : vector<8x16xf32>
        %114 = tpu.matmul %112, %113, %cst_70 {dimension_numbers = #tpu.dot_dimension_numbers<[1], [0], [0], [1], [0, 0, 1, 1], [], []>} : vector<8x8xf32>, vector<8x16xf32>, vector<8x16xf32> -> vector<8x16xf32>
        %c0_71 = arith.constant 0 : index
        %c0_72 = arith.constant 0 : index
        %115 = vector.load %arg15[%c0_71, %c0_72] : memref<1x16xf32, #tpu.memory_space<vmem>>, vector<1x16xf32>
        %116 = vector.broadcast %115 : vector<1x16xf32> to vector<8x16xf32>
        %117 = arith.addf %114, %116 : vector<8x16xf32>
        %cst_73 = arith.constant 0.000000e+00 : f32
        %118 = vector.broadcast %cst_73 : f32 to vector<8x16xf32>
        %119 = arith.cmpf ogt, %111, %118 : vector<8x16xf32>
        %cst_74 = arith.constant 0.00999999977 : f32
        %120 = vector.broadcast %cst_74 : f32 to vector<8x16xf32>
        %121 = arith.mulf %120, %111 : vector<8x16xf32>
        %122 = arith.select %119, %111, %121 : vector<8x16xi1>, vector<8x16xf32>
        %123 = arith.addf %117, %122 : vector<8x16xf32>
        %c0_75 = arith.constant 0 : index
        %c0_76 = arith.constant 0 : index
        %124 = vector.load %arg18[%c0_75, %c0_76] : memref<8x16xf32, #tpu.memory_space<vmem>>, vector<8x16xf32>
        tpu.vector_store %arg18[%c0_75, %c0_76], %123 {strides = array<i32>} : memref<8x16xf32, #tpu.memory_space<vmem>>, vector<8x16xf32>,
      } else {
      }
    } else {
    }
    return
  }
  func.func @transform_0(%arg0: i32, %arg1: i32) -> (i32, i32) {
    %c0_i32 = arith.constant 0 : i32
    %c0_i32_0 = arith.constant 0 : i32
    return %arg1, %c0_i32 : i32, i32
  }
  func.func @transform_1(%arg0: i32, %arg1: i32) -> (i32, i32) {
    %c0_i32 = arith.constant 0 : i32
    %c0_i32_0 = arith.constant 0 : i32
    return %arg1, %c0_i32 : i32, i32
  }
  func.func @transform_2(%arg0: i32, %arg1: i32) -> (i32, i32) {
    %c0_i32 = arith.constant 0 : i32
    %c0_i32_0 = arith.constant 0 : i32
    %c0_i32_1 = arith.constant 0 : i32
    return %c0_i32, %c0_i32_0 : i32, i32
  }
  func.func @transform_3(%arg0: i32, %arg1: i32) -> (i32, i32) {
    %c0_i32 = arith.constant 0 : i32
    %c0_i32_0 = arith.constant 0 : i32
    return %arg1, %c0_i32 : i32, i32
  }
  func.func @transform_4(%arg0: i32, %arg1: i32) -> (i32, i32) {
    %c0_i32 = arith.constant 0 : i32
    %c0_i32_0 = arith.constant 0 : i32
    return %arg1, %c0_i32 : i32, i32
  }
  func.func @transform_5(%arg0: i32, %arg1: i32) -> (i32, i32) {
    %c0_i32 = arith.constant 0 : i32
    %c0_i32_0 = arith.constant 0 : i32
    return %arg1, %c0_i32 : i32, i32
  }
  func.func @transform_6(%arg0: i32, %arg1: i32) -> (i32, i32) {
    %c0_i32 = arith.constant 0 : i32
    %c0_i32_0 = arith.constant 0 : i32
    %c0_i32_1 = arith.constant 0 : i32
    return %c0_i32, %c0_i32_0 : i32, i32
  }
  func.func @transform_7(%arg0: i32, %arg1: i32) -> (i32, i32) {
    %c0_i32 = arith.constant 0 : i32
    %c0_i32_0 = arith.constant 0 : i32
    %c0_i32_1 = arith.constant 0 : i32
    return %c0_i32, %c0_i32_0 : i32, i32
  }
  func.func @transform_8(%arg0: i32, %arg1: i32) -> (i32, i32) {
    %c0_i32 = arith.constant 0 : i32
    %c0_i32_0 = arith.constant 0 : i32
    %c0_i32_1 = arith.constant 0 : i32
    return %c0_i32, %c0_i32_0 : i32, i32
  }
  func.func @transform_9(%arg0: i32, %arg1: i32) -> (i32, i32) {
    %c0_i32 = arith.constant 0 : i32
    %c0_i32_0 = arith.constant 0 : i32
    %c0_i32_1 = arith.constant 0 : i32
    return %c0_i32, %c0_i32_0 : i32, i32
  }
  func.func @transform_10(%arg0: i32, %arg1: i32) -> (i32, i32) {
    %c0_i32 = arith.constant 0 : i32
    %c0_i32_0 = arith.constant 0 : i32
    %c0_i32_1 = arith.constant 0 : i32
    return %c0_i32, %c0_i32_0 : i32, i32
  }
  func.func @transform_11(%arg0: i32, %arg1: i32) -> (i32, i32) {
    %c0_i32 = arith.constant 0 : i32
    %c0_i32_0 = arith.constant 0 : i32
    %c0_i32_1 = arith.constant 0 : i32
    return %c0_i32, %c0_i32_0 : i32, i32
  }
  func.func @transform_12(%arg0: i32, %arg1: i32) -> (i32, i32) {
    %c0_i32 = arith.constant 0 : i32
    %c0_i32_0 = arith.constant 0 : i32
    %c0_i32_1 = arith.constant 0 : i32
    return %c0_i32, %c0_i32_0 : i32, i32
  }
  func.func @transform_13(%arg0: i32, %arg1: i32) -> (i32, i32) {
    %c0_i32 = arith.constant 0 : i32
    %c0_i32_0 = arith.constant 0 : i32
    %c0_i32_1 = arith.constant 0 : i32
    return %c0_i32, %c0_i32_0 : i32, i32
  }
  func.func @transform_14(%arg0: i32, %arg1: i32) -> (i32, i32) {
    %c0_i32 = arith.constant 0 : i32
    %c0_i32_0 = arith.constant 0 : i32
    %c0_i32_1 = arith.constant 0 : i32
    return %c0_i32, %c0_i32_0 : i32, i32
  }
  func.func @transform_15(%arg0: i32, %arg1: i32) -> (i32, i32) {
    %c0_i32 = arith.constant 0 : i32
    %c0_i32_0 = arith.constant 0 : i32
    %c0_i32_1 = arith.constant 0 : i32
    return %c0_i32, %c0_i32_0 : i32, i32
  }
  func.func @transform_16(%arg0: i32, %arg1: i32) -> (i32, i32) {
    %c0_i32 = arith.constant 0 : i32
    %c0_i32_0 = arith.constant 0 : i32
    %c0_i32_1 = arith.constant 0 : i32
    return %c0_i32, %c0_i32_0 : i32, i32
  }
  func.func @transform_17(%arg0: i32, %arg1: i32) -> (i32, i32) {
    %c0_i32 = arith.constant 0 : i32
    %c0_i32_0 = arith.constant 0 : i32
    return %arg1, %c0_i32 : i32, i32
  }
}

</mosaic_0001>

<bundles_post_ra>
// kernel: gnn_layer4.1
= control target key start
LH: loop header
LB: loop body
LE: loop exit
PB: predicated region body
PF: predicated region fallthrough
CT: control target
= control target key end

     0   :  { %s2585_s0 = inlined_call_operand.vmem [shape: s32[24,1], index: 0, kind: input, shape index: {}]   ;;  %s2586_s1 = inlined_call_operand.vmem [shape: s32[24,1], index: 1, kind: input, shape index: {}]   ;;  %s2587_s2 = inlined_call_operand.vmem [shape: f32[8,8], index: 2, kind: input, shape index: {}]   ;;  %s2588_s3 = inlined_call_operand.vmem [shape: f32[24,8], index: 3, kind: input, shape index: {}]   ;;  %s2589_s4 = inlined_call_operand.vmem [shape: f32[24,8], index: 4, kind: input, shape index: {}]   ;;  %s2590_s5 = inlined_call_operand.vmem [shape: f32[24,4], index: 5, kind: input, shape index: {}]   ;;  %s2591_s6 = inlined_call_operand.vmem [shape: f32[4,16], index: 6, kind: input, shape index: {}]   ;;  %s2592_s7 = inlined_call_operand.vmem [shape: f32[8,16], index: 7, kind: input, shape index: {}]   ;;  %s2593_s8 = inlined_call_operand.vmem [shape: f32[8,16], index: 8, kind: input, shape index: {}]   ;;  %s2594_s9 = inlined_call_operand.vmem [shape: f32[16,64], index: 9, kind: input, shape index: {}]   ;;  %s2595_s10 = inlined_call_operand.vmem [shape: f32[16,16], index: 10, kind: input, shape index: {}]   ;;  %s2596_s11 = inlined_call_operand.vmem [shape: f32[1,16], index: 11, kind: input, shape index: {}]   ;;  %s2597_s12 = inlined_call_operand.vmem [shape: f32[8,16], index: 12, kind: input, shape index: {}]   ;;  %s2598_s13 = inlined_call_operand.vmem [shape: f32[1,16], index: 13, kind: input, shape index: {}]   ;;  %s2599_s14 = inlined_call_operand.vmem [shape: f32[4,16], index: 14, kind: input, shape index: {}]   ;;  %s2600_s15 = inlined_call_operand.vmem [shape: f32[1,16], index: 15, kind: input, shape index: {}]   ;;  %s2601_s16 = inlined_call_operand.hbm [shape: f32[8,16], index: 16, kind: output, shape index: {0}]   ;;  %s2602_s17 = inlined_call_operand.vmem [shape: f32[24,16], index: 17, kind: output, shape index: {1}]  }
   0x1   :  { %2607 = sst [smem:[#allocation13_spill]] %s2585_s0 }
   0x2   :  { %2608 = sst [smem:[#allocation14_spill]] %s2586_s1 }
   0x3   :  { %2609 = sst [smem:[#allocation15_spill]] %s2587_s2 }
   0x4   :  { %2610 = sst [smem:[#allocation16_spill]] %s2596_s11 }
   0x5   :  { %2611 = sst [smem:[#allocation17_spill]] %s2597_s12 }
   0x6   :  { %2612 = sst [smem:[#allocation18_spill]] %s2598_s13 }
   0x7   :  { %2613 = sst [smem:[#allocation19_spill]] %s2601_s16 }
   0x8   :  { %23 = vsyncpa [#allocation6], 0  ;;  %s2357_s24 = smov 0   ;;  %s2359_s25 = smov 0  }
   0x9   :  { %s2361_s26 = smov 0   ;;  %s2363_s27 = smov 0  }
   0xa   :  { %s2365_s28 = smov 0  }
   0xb LB: > { %2614 = sst [smem:[#allocation8_spill]] %s2240_s26  ;;  %s38_s0 = sadd.s32 1, %s2240_s26  ;;  %s2248_s28 = sphi %s2365_s28, %s29_s28   ;;  %s2244_s27 = sphi %s2363_s27, %s2635_s27   ;;  %s2240_s26 = sphi %s2361_s26, %s2634_s26   ;;  %s2236_s25 = sphi %s2359_s25, %s2633_s25   ;;  %s2232_s24 = sphi %s2357_s24, %s2632_s24  }
   0xc   : > { %2615 = sst [smem:[#allocation9_spill]] %s2244_s27  ;;  %p39_p0 = scmp.ge.s32.totalorder %s38_s0, 3 }
   0xd   : > { %2616 = sst [smem:[#allocation10_spill]] %s2248_s28  ;;  %s41_s30 = sadd.s32 1, %s2244_s27 }
   0xe   : > { %p1937_p1 = scmp.ge.s32.totalorder %s2248_s28, 1  ;;  %p533_p2 = scmp.lt.s32.totalorder %s2248_s28, 7 }
   0xf   : > { %s2637_s0 = smov (%p39_p0, %s38_s0), 0  ;;  %s2639_s30 = smov (!%p39_p0, %s41_s30), %s2244_s27 }
  0x10   : > { %2617 = sst [smem:[#allocation11_spill]] %s2637_s0  ;;  %p534_p3 = pnand %p1937_p1, %p533_p2 }
  0x11   : > { %p43_p4 = scmp.ge.s32.totalorder %s2639_s30, 2  ;;  %p599_p5 = scmp.lt.s32.totalorder (!%p534_p3), %s2232_s24, 2 }
  0x12   : > { %537 = sbr.rel (%p534_p3) target bundleno = 1657 (0x679), region = 84  ;;  %p623_p6 = scmp.eq.s32.totalorder (!%p534_p3), %s2236_s25, 0 }
  0x13   : > { %s2641_s30 = smov (%p43_p4, %s2639_s30), 0  ;;  %p624_p7 = scmp.eq.s32.totalorder (!%p534_p3), %s2232_s24, 0 }
  0x14   : > { %2618 = sst [smem:[#allocation12_spill]] %s2641_s30  ;;  %s2619_s21 = sld [smem:[#allocation13_spill]] (!%p534_p3) }
  0x15   : > { %p625_p8 = pnand (!%p534_p3), %p624_p7, %p623_p6  ;;  %s2620_s30 = sld [smem:[#allocation14_spill]] (!%p534_p3) }
  0x19   : > { %s600_s18 = scalar_select %p599_p5, %s2232_s24, 2 }
  0x1a   : > { %628 = sbr.rel (%p625_p8) target bundleno = 33 (0x21), region = 88  ;;  %vm629_vm0 = vcmask (!%p625_p8), 516096   ;;  %vm631_vm1 = vcmask (!%p625_p8), 523264   ;;  %v2250_v0 = vmov (!%p625_p8), -1e+30   ;;  %v2251_v1 = vmov (!%p625_p8), 0.0  }
  0x1b   : > { %s2396_s19 = sshll.u32 %s600_s18, 3  ;;  %630 = vst.msk [vmem:[#allocation2] sm:$0x1] (!%p625_p8), %vm629_vm0, %v2250_v0  ;;  %vm633_vm2 = vcmask (!%p625_p8), 130048  }
  0x1c   : > { %s602_s22 = scalar_lea.vmem %s2619_s21, %s2396_s19  ;;  %s606_s0 = scalar_lea.vmem %s2620_s30, %s2396_s19  ;;  %632 = vst.msk [vmem:[#allocation3] sm:$0xff] (!%p625_p8), %vm631_vm1, %v2251_v1 }
  0x1d   : > { %s610_s16 = scalar_lea.vmem %s2588_s3, %s2396_s19  ;;  %s614_s13 = scalar_lea.vmem %s2589_s4, %s2396_s19  ;;  %634 = vst.msk [vmem:[#allocation4] sm:$0xff] (!%p625_p8), %vm633_vm2, %v2251_v1 }
  0x1e   : > { %s618_s20 = scalar_lea.vmem %s2590_s5, %s2396_s19  ;;  %s622_s21 = scalar_lea.vmem %s2602_s17, %s2396_s19 }
  0x21 PF: > { %v659_v2 = vld [vmem:[%s2592_s7] sm:$0xff]  ;;  %vm660_vm3 = vcmask 64512   ;;  %v2252_v4 = vmov 0.0   ;;  %vm2253_vm4 = vmmov 0   ;;  %vm738_vm5 = vcmask 1043456   ;;  %v892_v10 = vld [vmem:[%s2594_s9 + $0x8] sm:$0xff] }
  0x22   : > { %v658_v3 = vld [vmem:[%s610_s16] sm:$0xff]  ;;  %2010 = vmatprep.subr.mxu0 %v2252_v4  ;;  %2012 = vmatprep.mubr.msk.f32.mxu0 %vm2253_vm4, %v2252_v4  ;;  %vm734_vm6 = vcmask 31744   ;;  %v2254_v12 = vmov 0.0|0.0   ;;  %v2255_v14 = vmov 0   ;;  %vm893_vm11 = vcmask 130048   ;;  %p1955_p9 = scmp.ne.s32.totalorder %s2236_s25, 0 }
  0x23   : > { %v657_v5 = vld [vmem:[%s2591_s6] sm:$0xf]  ;;  %2011 = vmatpush3.msra.mxu0 %v659_v2  ;;  %2029 = vmatprep.mubr.msk.f32.mxu1 %vm2253_vm4, %v2252_v4  ;;  %v637_v23 = vlaneseq  ;;  %vm1060_vm15 = vcmask (!%p1955_p9), 523264   ;;  %v2256_v39 = vmov (!%p1955_p9), 0   ;;  %v2257_v42 = vmov (!%p1955_p9), 0.0  }
  0x24   : > { %2013 = vmatmul.mubr.msk.f32.vlgmr.msra.gmra.mrb[0].mxu0 %vm660_vm3, %v658_v3  ;;  %2015 = vmatprep.subr.mxu0 %v2252_v4  ;;  %v656_v6 = vld [vmem:[%s618_s20] sm:$0xff]  ;;  %vm2258_vm0 = vmmov (!%p1955_p9), 0   ;;  %vm1202_vm1 = vcmask (!%p1955_p9), 516096  }
  0x25   : > { %2016 = vmatpush3.msk.msra.mxu0 %vm738_vm5, %v657_v5  ;;  %2017 = vmatprep.mubr.msk.f32.mxu0 %vm2253_vm4, %v2252_v4  ;;  %v813_v7 = vld [vmem:[%s2593_s8] sm:$0xff]  ;;  %v2473_v25 = vand.u32 127, %v637_v23  ;;  %v1071_v52 = vshrl.u32 (!%p1955_p9), %v637_v23, 7 }
  0x26   : > { %2020 = vmatprep.subr.mxu0 %v2252_v4  ;;  %v812_v8 = vld [vmem:[%s614_s13] sm:$0xff]  ;;  %2083 = vmatprep.subr.bf16.mxu1 %v2254_v12 }
  0x27   : > { %v891_v9 = vld [vmem:[%s2594_s9] sm:$0xff]  ;;  %2169 = vset.pattern.permute.xlu1 %v2255_v14  ;;  %2168 = vset.pattern.permute.xlu0 %v2255_v14  ;;  %v1072_v53 = vsub.s32 (!%p1955_p9), 0, %v1071_v52 }
  0x28   : > { %v2084_v11 = vpack.c.bf16 %v892_v10, %v891_v9  ;;  %v635_v13 = vld [vmem:[%s602_s22] sm:$0xff] }
  0x29   : > { %vm651_vm7 = vcmp.ge.s32.totalorder %v635_v13, 0  ;;  %vm652_vm8 = vcmp.lt.s32.totalorder %v635_v13, 8  ;;  %640 = vperm.xlu0 %2168, %v635_v13   ;;  %v636_v17 = vld [vmem:[%s606_s0] sm:$0xff] }
  0x2a   : > { %2085 = vmatpush3.bf16.msra.mxu1 %v2084_v11  ;;  %vm653_vm9 = vmand %vm651_vm7, %vm652_vm8  ;;  %v972_v21 = vld [vmem:[%s2599_s14] sm:$0xf] }
  0x2b   : > { %2032 = vmatprep.subr.mxu1 %v2252_v4  ;;  %v654_v15 = vsel %vm653_vm9, 1, %v2255_v14  ;;  %v2455_v16 = vsel %vm653_vm9, 1.0, %v2252_v4  ;;  %v1952_v33 = vld [vmem:[%s2600_s15] ss:$0 sm:$0xff]  ;;  %v1084_v63 = vld [vmem:[#allocation3] sm:$0xff] (!%p1955_p9) }
  0x2c   : > { %2018 = vmatmul.mubr.msk.f32.vlgmr.msra.gmra.mrb[0].mxu0 %vm734_vm6, %v656_v6  ;;  %968 = vperm.xlu1 %2169, %v654_v15   ;;  %v1059_v47 = vld [vmem:[#allocation2] sm:$0x1] (!%p1955_p9) }
  0x2d   : > { %2021 = vmatpush3.msra.mxu0 %v813_v7  ;;  %2022 = vmatprep.mubr.msk.f32.mxu0 %vm2253_vm4, %v2252_v4 }
  0x2e   : > { %646 = vperm.xlu0 %2168, %v636_v17   ;;  %2037 = vmatprep.subr.mxu0 (!%p1955_p9), %v2257_v42 }
  0x32   : > { %2170 = vset.pattern.permute.xlu0 (!%p1955_p9), %v2256_v39 }
  0x33   : > { %1080 = vperm.xlu0 (!%p1955_p9), %2170, %v2455_v16  }
  0x34   : > { %2023 = vmatmul.mubr.msk.f32.vlgmr.msra.gmra.mrb[0].mxu0 %vm660_vm3, %v812_v8 }
  0x35   : > { %2039 = vmatprep.mubr.msk.f32.mxu0 (!%p1955_p9), %vm2258_vm0, %v2257_v42 }
  0xa8   : > { %v641_v24 = vpop.permute.xlu0 %640 }
  0xa9   : > { %vm642_vm12 = vcmp.eq.s32.totalorder %v641_v24, %v2473_v25 }
  0xaa   : > { %v2476_v27 = vsel %vm642_vm12, 1.0, %v2252_v4 }
  0xab   : > { %v969_v29 = vpop.permute.xlu1 %968  ;;  %1095 = vxpose.xlu0.b32.start.end [1/1] (short) (narrow) (!%p1955_p9), %v2476_v27, 8 }
  0xac   : > { %vm970_vm14 = vcmp.eq.s32.totalorder %v969_v29, 1 }
  0xad   : > { %v647_v26 = vpop.permute.xlu0 %646 }
  0xae   : > { %vm648_vm13 = vcmp.eq.s32.totalorder %v647_v26, %v2473_v25 }
  0xaf   : > { %v2479_v28 = vsel %vm648_vm13, 1.0, %v2252_v4 }
  0xb2   : > { %v1081_v60 = vpop.permute.xlu0 (!%p1955_p9), %1080 }
 0x107   : > { %v883_v18 = vpop.f32.mrb[0].mxu0 }
 0x108   : > { %vm888_vm10 = vcmp.gt.f32.partialorder %v883_v18, 0.0  ;;  %v889_v19 = vmul.f32 0.01, %v883_v18  ;;  %v2024_v20 = vpop.f32.mrb[1].mxu0 }
 0x10a   : > { %v2465_v22 = vsel %vm888_vm10, %v883_v18, %v889_v19 }
 0x10b   : > { %2030 = vmatmul.mubr.msk.f32.vlgmr.msra.gmra.mrb[0].mxu1 %vm893_vm11, %v2465_v22 }
 0x10c   : > { %2033 = vmatpush3.msk.msra.mxu1 %vm738_vm5, %v972_v21  ;;  %2034 = vmatprep.mubr.msk.f32.mxu1 %vm2253_vm4, %v2252_v4 }
 0x10f   : > { %2035 = vmatmul.mubr.msk.f32.vlgmr.msra.gmra.mrb[2].mxu1 %vm734_vm6, %v656_v6 }
 0x12b   : > { %v1111_v62 = vpop.trf.xlu0 (!%p1955_p9) }
 0x1de   : > { %v963_v30 = vpop.f32.mrb[0].mxu1 }
 0x1df   : > { %v2481_v31 = vsel %vm970_vm14, %v963_v30, -1e+30  ;;  %v2031_v32 = vpop.f32.mrb[1].mxu1 }
 0x1e0   : > { %v1061_v40 = vsel (!%p1955_p9), %vm1060_vm15, %v2481_v31, -inf }
 0x1e1   : > { %v1062_v41 = vrot.slane (!%p1955_p9), %v1061_v40, 4 }
 0x1e2   : > { %v1049_v34 = vpop.f32.mrb[2].mxu1 }
 0x1e3   : > { %v1050_v35 = vadd.f32 %v1952_v33, %v1049_v34  ;;  %v2036_v36 = vpop.f32.mrb[3].mxu1  ;;  %1058 = sbr.rel (%p1955_p9) target bundleno = 730 (0x2da), region = 92  ;;  %v1063_v43 = vmax.f32 (!%p1955_p9), %v1061_v40, %v1062_v41 }
 0x1e5   : > { %v1053_v37 = vadd.f32 %v1050_v35, %v2465_v22  ;;  %v1064_v44 = vrot.slane (!%p1955_p9), %v1063_v43, 2 }
 0x1e7   : > { %v1054_v38 = vmul.f32 0.5, %v1053_v37  ;;  %v1065_v45 = vmax.f32 (!%p1955_p9), %v1063_v43, %v1064_v44 }
 0x1e9   : > { %1055 = vst.msk [vmem:[%s622_s21] sm:$0xff] %vm893_vm11, %v1054_v38  ;;  %v1066_v46 = vrot.slane (!%p1955_p9), %v1065_v45, 1 }
 0x1eb   : > { %v1067_v48 = vmax.f32 %v1065_v45, %v1066_v46 }
 0x1ed   : > { %v1068_v49 = vmax.f32 %v1059_v47, %v1067_v48 }
 0x1ef   : > { %1203 = vst.msk [vmem:[#allocation2] sm:$0x1] %vm1202_vm1, %v1068_v49  ;;  %v1085_v50 = vsub.f32 %v1059_v47, %v1068_v49  ;;  %v1073_v56 = vrot.slane %v1068_v49, %v1072_v53 }
 0x1f1   : > { %v1086_v51 = vmul.f32 1.442695, %v1085_v50  ;;  %v1075_v57 = vsub.f32 %v2481_v31, %v1073_v56 }
 0x1f3   : > { %2171 = vpow2.f32 %v1086_v51  ;;  %v1076_v58 = vmul.f32 1.442695, %v1075_v57 }
 0x1f5   : > { %2173 = vpow2.f32 %v1076_v58 }
 0x1fd   : > { %v2172_v54 = vpop.eup %2171 }
 0x1fe   : > { %v1092_v55 = vrot.slane %v2172_v54, %v1072_v53 }
 0x1ff   : > { %v2174_v59 = vpop.eup %2173 }
 0x200   : > { %v1083_v61 = vmul.f32 %v2174_v59, %v1081_v60  ;;  %v1094_v0 = vmul.f32 %v1092_v55, %v1084_v63 }
 0x202   : > { %2038 = vmatpush3.msra.mxu0 %v1083_v61 }
 0x203   : > { %2040 = vmatmul.mubr.msk.f32.vlgmr.msra.gmra.mrb[0].mxu0 %vm660_vm3, %v1111_v62 }
 0x2d6   : > { %v1196_v1 = vpop.f32.mrb[0].mxu0 }
 0x2d7   : > { %v1200_v2 = vadd.f32 %v1196_v1, %v1094_v0  ;;  %v2041_v3 = vpop.f32.mrb[1].mxu0 }
 0x2d9   : > { %1201 = vst.msk [vmem:[#allocation3] sm:$0xff] %vm1060_vm15, %v1200_v2 }
 0x2da PF: > { %p1957_p10 = scmp.ne.s32.totalorder %s2236_s25, 1 }
 0x2db   : > { %v2259_v5 = vmov (!%p1957_p10), 0.0   ;;  %vm2260_vm2 = vmmov (!%p1957_p10), 0   ;;  %v2261_v6 = vmov (!%p1957_p10), 0   ;;  %v1303_v7 = vshrl.u32 (!%p1957_p10), %v637_v23, 7  ;;  %v1958_v47 = vld [vmem:[#allocation2] ss:$0 sm:$0xff] (!%p1957_p10) }
 0x2dc   : > { %1207 = sbr.rel (%p1957_p10) target bundleno = 1622 (0x656), region = 96  ;;  %2042 = vmatprep.subr.mxu0 (!%p1957_p10), %v2259_v5  ;;  %2044 = vmatprep.mubr.msk.f32.mxu0 (!%p1957_p10), %vm2260_vm2, %v2259_v5  ;;  %v2262_v20 = vmov (!%p1957_p10), 0.0|0.0   ;;  %v1215_v48 = vsub.f32 (!%p1957_p10), %v2481_v31, %v1958_v47  ;;  %vm1439_vm14 = vcmask (!%p1957_p10), 523264   ;;  %v1513_v31 = vld [vmem:[#allocation4] sm:$0xff] (!%p1957_p10)  ;;  %p1970_p11 = scmp.ne.s32.totalorder (!%p1957_p10), %s2232_s24, 2 }
 0x2dd   : > { %2175 = vset.pattern.permute.xlu0 (!%p1957_p10), %v2261_v6  ;;  %2063 = vmatprep.mubr.msk.f32.mxu1 (!%p1957_p10), %vm2260_vm2, %v2259_v5  ;;  %v1304_v8 = vadd.s32 (!%p1957_p10), 8, %v1303_v7  ;;  %v1315_v9 = vand.u32 (!%p1957_p10), 15, %v1303_v7  ;;  %v1305_v11 = vadd.s32 (!%p1957_p10), 16, %v1303_v7  ;;  %v1306_v12 = vadd.s32 (!%p1957_p10), 24, %v1303_v7 }
 0x2de   : > { %1220 = vperm.xlu0 (!%p1957_p10), %2175, %v2455_v16   ;;  %2086 = vmatprep.subr.bf16.mxu1 (!%p1957_p10), %v2262_v20  ;;  %v1307_v24 = vadd.s32 (!%p1957_p10), 32, %v1303_v7  ;;  %v1308_v26 = vadd.s32 (!%p1957_p10), 40, %v1303_v7  ;;  %v1309_v33 = vadd.s32 (!%p1957_p10), 48, %v1303_v7  ;;  %v1310_v34 = vadd.s32 (!%p1957_p10), 56, %v1303_v7 }
 0x2df   : > { %v1322_v10 = vand.u32 (!%p1957_p10), 15, %v1304_v8  ;;  %vm1407_vm4 = vcmp.eq.s32.totalorder (!%p1957_p10), %v1315_v9, %v2473_v25  ;;  %v1329_v17 = vand.u32 (!%p1957_p10), 15, %v1305_v11  ;;  %v1336_v18 = vand.u32 (!%p1957_p10), 15, %v1306_v12 }
 0x2e0   : > { %v1224_v4 = vld [vmem:[#allocation3] sm:$0xff] (!%p1957_p10)  ;;  %v1960_v13 = vsel (!%p1957_p10), %vm1407_vm4, 1.0, %v2259_v5  ;;  %v1343_v29 = vand.u32 (!%p1957_p10), 15, %v1307_v24  ;;  %v1350_v30 = vand.u32 (!%p1957_p10), 15, %v1308_v26  ;;  %v1357_v37 = vand.u32 (!%p1957_p10), 15, %v1309_v33 }
 0x2e1   : > { %2043 = vmatpush3.msra.mxu0 (!%p1957_p10), %v1224_v4  ;;  %vm1408_vm5 = vcmp.eq.s32.totalorder (!%p1957_p10), %v1322_v10, %v2473_v25  ;;  %v1431_v15 = vmul.f32 (!%p1957_p10), 0.25, %v1960_v13  ;;  %vm1409_vm6 = vcmp.eq.s32.totalorder (!%p1957_p10), %v1329_v17, %v2473_v25  ;;  %vm1410_vm7 = vcmp.eq.s32.totalorder (!%p1957_p10), %v1336_v18, %v2473_v25 }
 0x2e2   : > { %2045 = vmatmul.mubr.msk.f32.vlgmr.msra.gmra.mrb[0].mxu0 (!%p1957_p10), %vm660_vm3, %v2476_v27  ;;  %2066 = vmatprep.subr.mxu0 (!%p1957_p10), %v2259_v5  ;;  %v1961_v14 = vsel (!%p1957_p10), %vm1408_vm5, 1.0, %v2259_v5  ;;  %v1962_v21 = vsel (!%p1957_p10), %vm1409_vm6, 1.0, %v2259_v5  ;;  %v1963_v23 = vsel (!%p1957_p10), %vm1410_vm7, 1.0, %v2259_v5  ;;  %vm1411_vm8 = vcmp.eq.s32.totalorder (!%p1957_p10), %v1343_v29, %v2473_v25 }
 0x2e3   : > { %2068 = vmatprep.mubr.msk.f32.mxu0 %vm2260_vm2, %v2259_v5  ;;  %v1432_v16 = vmul.f32 0.25, %v1961_v14  ;;  %v1433_v27 = vmul.f32 0.25, %v1962_v21  ;;  %vm1412_vm9 = vcmp.eq.s32.totalorder %v1350_v30, %v2473_v25  ;;  %v1964_v35 = vsel %vm1411_vm8, 1.0, %v2259_v5  ;;  %v1627_v0 = vld [vmem:[%s2595_s10] sm:$0xff] (!%p1970_p11)  ;;  %s2623_s1 = sld [smem:[#allocation17_spill]] (!%p1970_p11)  ;;  %s2624_s26 = sld [smem:[#allocation15_spill]] (!%p1970_p11) }
 0x2e4   : > { %v1965_v36 = vsel %vm1412_vm9, 1.0, %v2259_v5  ;;  %v1364_v38 = vand.u32 15, %v1310_v34  ;;  %v1435_v39 = vmul.f32 0.25, %v1964_v35  ;;  %vm1413_vm10 = vcmp.eq.s32.totalorder %v1357_v37, %v2473_v25  ;;  %s2625_s2 = sld [smem:[#allocation16_spill]] (!%p1970_p11)  ;;  %s2626_s12 = sld [smem:[#allocation18_spill]] (!%p1970_p11) }
 0x2e5   : > { %v2087_v19 = vpack.c.bf16 %v1432_v16, %v1431_v15  ;;  %v1436_v40 = vmul.f32 0.25, %v1965_v36  ;;  %v1966_v42 = vsel %vm1413_vm10, 1.0, %v2259_v5  ;;  %v1216_v49 = vmul.f32 1.442695, %v1215_v48 }
 0x2e6   : > { %vm1414_vm12 = vcmp.eq.s32.totalorder %v1364_v38, %v2473_v25  ;;  %v1437_v44 = vmul.f32 0.25, %v1966_v42  ;;  %v2263_v1 = vmov (!%p1970_p11), 0.0|0.0   ;;  %vm2264_vm15 = vmmov (!%p1970_p11), 0  }
 0x2e7   : > { %2088 = vmatpush3.bf16.msra.mxu1 %v2087_v19  ;;  %v2093_v41 = vpack.c.bf16 %v1436_v40, %v1435_v39  ;;  %v1967_v43 = vsel %vm1414_vm12, 1.0, %v2259_v5  ;;  %2176 = vpow2.f32 %v1216_v49  ;;  %v2265_v3 = vmov (!%p1970_p11), 0.0  }
 0x2e8   : > { %2089 = vmatprep.subr.bf16.mxu1 %v2262_v20  ;;  %v1438_v45 = vmul.f32 0.25, %v1967_v43 }
 0x2e9   : > { %v1710_v4 = vld [vmem:[%s2623_s1] sm:$0xff] (!%p1970_p11) }
 0x2ea   : > { %v2096_v46 = vpack.c.bf16 %v1438_v45, %v1437_v44  ;;  %v1709_v5 = vld [vmem:[%s2624_s26] sm:$0xff] (!%p1970_p11) }
 0x2eb   : > { %v1971_v7 = vld [vmem:[%s2625_s2] ss:$0 sm:$0xff] (!%p1970_p11) }
 0x2ec   : > { %v1973_v9 = vld [vmem:[%s2626_s12] ss:$0 sm:$0xff] (!%p1970_p11) }
 0x2f1   : > { %v2177_v25 = vpop.eup %2176 }
 0x2fc   : > { %1515 = vxpose.xlu0.b32.start.end [1/1] (short) (narrow) %v2479_v28, 8  ;;  %v1434_v28 = vmul.f32 0.25, %v1963_v23 }
 0x2fe   : > { %v2090_v32 = vpack.c.bf16 %v1434_v28, %v1433_v27 }
 0x300   : > { %2091 = vmatpush3.bf16.msra.mxu1 %v2090_v32 }
 0x301   : > { %2092 = vmatprep.subr.bf16.mxu1 %v2262_v20 }
 0x304   : > { %2094 = vmatpush3.bf16.msra.mxu1 %v2093_v41 }
 0x305   : > { %2095 = vmatprep.subr.bf16.mxu1 %v2262_v20 }
 0x308   : > { %2097 = vmatpush3.bf16.msra.mxu1 %v2096_v46 }
 0x309   : > { %2078 = vmatprep.subr.mxu1 (!%p1970_p11), %v2265_v3 }
 0x35d   : > { %v1221_v53 = vpop.permute.xlu0 %1220 }
 0x35e   : > { %v1223_v54 = vmul.f32 %v2177_v25, %v1221_v53 }
 0x37c   : > { %v1531_v60 = vpop.trf.xlu0 }
 0x3b5   : > { %v1294_v50 = vpop.f32.mrb[0].mxu0 }
 0x3b6   : > { %vm1298_vm13 = vcmp.gt.f32.partialorder %v1294_v50, 0.0  ;;  %v2046_v51 = vpop.f32.mrb[1].mxu0 }
 0x3b7   : > { %v1299_v52 = vsel %vm1298_vm13, %v1294_v50, 1.0 }
 0x3b8   : > { %2178 = vrcp.f32 %v1299_v52 }
 0x3c2   : > { %v2179_v55 = vpop.eup %2178 }
 0x3c3   : > { %v1301_v56 = vmul.f32 %v2179_v55, %v1223_v54 }
 0x3c5   : > { %2064 = vmatmul.mubr.msk.f32.vlgmr.msra.gmra.mrb[0].mxu1 %vm1439_vm14, %v1301_v56 }
 0x3c6   : > { %2080 = vmatprep.mubr.msk.f32.mxu1 (!%p1970_p11), %vm2264_vm15, %v2265_v3  ;;  %2079 = vmatpush3.msra.mxu1 (!%p1970_p11), %v1710_v4 }
 0x498   : > { %v1509_v57 = vpop.f32.mrb[0].mxu1 }
 0x499   : > { %v1514_v58 = vmul.f32 %v1509_v57, %v2465_v22  ;;  %v2065_v59 = vpop.f32.mrb[1].mxu1  ;;  %v1628_v22 = vld [vmem:[%s2595_s10 + $0x8] sm:$0xff] (!%p1970_p11)  ;;  %2081 = vmatmul.mubr.msk.f32.vlgmr.msra.gmra.mrb[0].mxu1 (!%p1970_p11), %vm660_vm3, %v1709_v5 }
 0x49a   : > { %v2099_v2 = vpack.c.bf16 (!%p1970_p11), %v1628_v22, %v1627_v0 }
 0x49b   : > { %2067 = vmatpush3.msra.mxu0 %v1514_v58 }
 0x49c   : > { %2069 = vmatmul.mubr.msk.f32.vlgmr.msra.gmra.mrb[2].mxu0 %vm660_vm3, %v1531_v60  ;;  %2098 = vmatprep.subr.bf16.mxu0 (!%p1970_p11), %v2263_v1 }
 0x49d   : > { %2075 = vmatprep.mubr.msk.f32.mxu0 (!%p1970_p11), %vm2264_vm15, %v2265_v3  ;;  %2100 = vmatpush3.bf16.msra.mxu0 (!%p1970_p11), %v2099_v2 }
 0x56c   : > { %1625 = sbr.rel (%p1970_p11) target bundleno = 1622 (0x656), region = 100  ;;  %v1787_v8 = vpop.f32.mrb[0].mxu1 (!%p1970_p11) }
 0x56d   : > { %v2082_v10 = vpop.f32.mrb[1].mxu1 (!%p1970_p11)  ;;  %v1788_v14 = vadd.f32 (!%p1970_p11), %v1973_v9, %v1787_v8 }
 0x56f   : > { %v1616_v61 = vpop.f32.mrb[2].mxu0 }
 0x570   : > { %v1620_v62 = vadd.f32 %v1616_v61, %v1513_v31  ;;  %v2070_v63 = vpop.f32.mrb[3].mxu0 }
 0x572   : > { %1621 = vst.msk [vmem:[#allocation4] sm:$0xff] %vm893_vm11, %v1620_v62 }
 0x579   : > { %v1626_v6 = vld [vmem:[#allocation4] sm:$0xff] }
 0x57a   : > { %2076 = vmatmul.mubr.msk.f32.vlgmr.msra.gmra.mrb[0].mxu0 %vm893_vm11, %v1626_v6 }
 0x64d   : > { %v1705_v11 = vpop.f32.mrb[0].mxu0 }
 0x64e   : > { %v1706_v12 = vadd.f32 %v1971_v7, %v1705_v11  ;;  %v2077_v13 = vpop.f32.mrb[1].mxu0 }
 0x650   : > { %vm1791_vm0 = vcmp.gt.f32.partialorder %v1706_v12, 0.0  ;;  %v1792_v15 = vmul.f32 0.01, %v1706_v12 }
 0x652   : > { %v1793_v16 = vsel %vm1791_vm0, %v1706_v12, %v1792_v15 }
 0x653   : > { %v1794_v17 = vadd.f32 %v1793_v16, %v1788_v14 }
 0x655   : > { %1795 = vst.msk [vmem:[#allocation5] sm:$0xff] %vm893_vm11, %v1794_v17 }
 0x656 PF: > { %s2627_s0 = sld [smem:[#allocation10_spill]]  ;;  %s2266_s29 = smov [#allocation5]  }
 0x657   : > { %s1807_s25 = sshll.u32 %s2266_s29, 4  ;;  %s1808_s25 = int_to_ptr.vmem [resolvable:$true] %s1807_s25 }
 0x658   : > { %s2180_s19 = scalar_lea.vmem %s1808_s25, 128  ;;  %p2187_p2 = scmp.lt.s32.totalorder %s1808_s25, %s1808_s25 }
 0x659   : > { %p2181_p13 = scmp.ne.s32.totalorder %s1808_s25, %s2180_s19  ;;  %p2188_p3 = scmp.lt.s32.totalorder %s2180_s19, %s2180_s19 }
 0x65b   : > { %p2189_p4 = por %p2188_p3, %p2187_p2 }
 0x65c   : > { %s2628_s16 = sadd.s32 4294967295, %s2627_s0  }
 0x65d   : > { %p2544_p12 = scmp.eq.s32.totalorder %s2628_s16, 5 }
 0x65f   : > { %p2182_p0 = pnand %p2181_p13, %p2544_p12 }
 0x661   : > { %p2183_p1 = pneg %p2182_p0 }
 0x663   : > { %p2190_p5 = pnand %p2189_p4, %p2183_p1 }
 0x665   : > { %2193 = shalt.err (!%p2190_p5)
}
 0x666   : > { %s2630_s23 = sld [smem:[#allocation19_spill]] }
 0x66c   : > { %s2194_s18 = scalar_lea.hbm %s2630_s23, 128 }
 0x66d   : > { %p2195_p6 = scmp.ne.s32.totalorder %s2630_s23, %s2194_s18  ;;  %p2200_p9 = scmp.lt.u32.totalorder %s2194_s18, %s2630_s23 }
 0x66f   : > { %p2196_p7 = pnand %p2195_p6, %p2544_p12 }
 0x671   : > { %p2197_p8 = pneg %p2196_p7 }
 0x673   : > { %p2202_p10 = pnand %p2200_p9, %p2197_p8 }
 0x675   : > { %2205 = shalt.err (!%p2202_p10)
}
 0x676   : > { %2106 = dma.vmem_to_hbm [thread:$0]  (%p2544_p12), %s1808_s25, 128, %s2630_s23, [#allocation6]  }
 0x677   : > { %2227 = dma.done.wait (%p2544_p12), [#allocation6], 128  }
 0x678   : > { %2229 = vsyncadd (%p2544_p12), [#allocation6], 4294967168 }
 0x679 PF: > { %s2631_s2 = sld [smem:[#allocation10_spill]]  ;;  %s2632_s24 = sld [smem:[#allocation8_spill]] }
 0x67a   : > { %s2633_s25 = sld [smem:[#allocation9_spill]]  ;;  %s2634_s26 = sld [smem:[#allocation11_spill]] }
 0x67b   : > { %s2635_s27 = sld [smem:[#allocation12_spill]] }
 0x67f   : > { %s29_s28 = sadd.s32 1, %s2631_s2  }
 0x680   : > { %p26_p11 = scmp.ge.s32.totalorder %s29_s28, 8  }
 0x682   :  { %28 = sbr.rel (!%p26_p11) target bundleno = 11 (0xb), region = 151 }
 0x689   :  { %1830 = vsyncpa [#allocation6], 1 }
 0x68a   :  { %1832 = vsyncpa [#allocation6 + $0x1], 1 }

</bundles_post_ra>
